<compile_context>
chip_gen: v7x
topology: tpu7x:2x2x1
jax: 0.10.0
libtpu: 0.0.40
codegen_flags: <defaults>
</compile_context>

<pallas_src>
import jax
import jax.numpy as jnp
from jax.experimental import pallas as pl
from jax.experimental.pallas import tpu as pltpu


LANE = 128
FEAT_EXTRACT_LAYER = "layer1"
C_FEAT = 32      # stand-in 'layer1' channel count (real model: 256)
C_REDUCE = 16    # channel_reduce out_channels
STEM_K, STEM_S, STEM_P = 7, 4, 3

assert C_FEAT + C_REDUCE <= LANE, "packed output slab requires C_FEAT + C_REDUCE <= 128"


def _round_up(x, m):
    return (x + m - 1) // m * m


# -----------------------------------------------------------------------------
# Fused Pallas kernel (one lane-dense bf16 output slab per tile):
#   y1 = relu(X @ W1 + b1)   lanes [0:C_FEAT]              (stem conv, BN folded)
#   y2 = relu(y1 @ W2 + b2)  lanes [C_FEAT:C_FEAT+C_REDUCE] (1x1 reduce, BN folded)
#   out = y1_bf16 + y2_bf16  (disjoint non-zero lanes -> exact packing, no shuffle)
# -----------------------------------------------------------------------------
def _fused_stem_reduce_kernel(x_ref, w1_ref, b1_ref, w2_ref, b2_ref, out_ref):
    y1 = jnp.dot(x_ref[...], w1_ref[...], preferred_element_type=jnp.float32)
    y1 = jnp.maximum(y1 + b1_ref[...], 0.0)          # non-zero only in lanes [0:C_FEAT]
    y1_bf = y1.astype(jnp.bfloat16)                   # reused: store + LHS of 2nd dot
    y2 = jnp.dot(y1_bf, w2_ref[...], preferred_element_type=jnp.float32)
    y2 = jnp.maximum(y2 + b2_ref[...], 0.0)          # non-zero only in lanes [C_FEAT:C_FEAT+C_REDUCE]
    out_ref[...] = y1_bf + y2.astype(jnp.bfloat16)    # exact pack (disjoint lanes)


def fused_stem_reduce(x, w1, b1, w2, b2, *, tile_m):
    """All operands pre-aligned:
       x : (Mp, Kp)   bf16, Mp % tile_m == 0, Kp % 128 == 0
       w1: (Kp, 128)  bf16 (cols [0:C_FEAT] real),          b1: (1, 128) f32
       w2: (128, 128) bf16 (cols [C_FEAT:C_FEAT+C_RED] real), b2: (1, 128) f32
    Returns packed slab (Mp, 128) bf16."""
    Mp, Kp = x.shape
    grid = (Mp // tile_m,)

    flops = 2 * Mp * (Kp * LANE + LANE * LANE)
    bytes_accessed = (Mp * Kp * 2            # x read (bf16)
                      + Mp * LANE * 2        # packed output write (bf16)
                      + Kp * LANE * 2 + LANE * LANE * 2   # weights (bf16)
                      + 2 * LANE * 4)        # biases (f32)

    return pl.pallas_call(
        _fused_stem_reduce_kernel,
        out_shape=jax.ShapeDtypeStruct((Mp, LANE), jnp.bfloat16),
        grid_spec=pltpu.PrefetchScalarGridSpec(
            num_scalar_prefetch=0,
            grid=grid,
            in_specs=[
                pl.BlockSpec((tile_m, Kp), lambda i: (i, 0)),
                pl.BlockSpec((Kp, LANE), lambda i: (0, 0)),    # grid-invariant weights
                pl.BlockSpec((1, LANE), lambda i: (0, 0)),
                pl.BlockSpec((LANE, LANE), lambda i: (0, 0)),
                pl.BlockSpec((1, LANE), lambda i: (0, 0)),
            ],
            out_specs=pl.BlockSpec((tile_m, LANE), lambda i: (i, 0)),
        ),
        compiler_params=pltpu.CompilerParams(
            dimension_semantics=("parallel",)),
        cost_estimate=pl.CostEstimate(
            flops=flops, transcendentals=0, bytes_accessed=bytes_accessed),
    )(x, w1, b1, w2, b2)


# -----------------------------------------------------------------------------
# Glue: NHWC im2col with the bf16 cast and K-padding fused in (one concat, no
# extra f32 materialization of the big patch array).
# -----------------------------------------------------------------------------
def _im2col_nhwc_padded(x_nhwc, kh, kw, stride, padding, k_pad):
    """x: (N, H, W, C) f32 -> patches (N*Ho*Wo, kh*kw*C + k_pad) bf16,
    tap-major / channel-minor, trailing k_pad zero columns."""
    n, h, w, c = x_nhwc.shape
    xb = x_nhwc.astype(jnp.bfloat16)                  # cast BEFORE replication
    xp = jnp.pad(xb, ((0, 0), (padding, padding), (padding, padding), (0, 0)))
    ho = (h + 2 * padding - kh) // stride + 1
    wo = (w + 2 * padding - kw) // stride + 1
    taps = []
    for i in range(kh):
        for j in range(kw):
            taps.append(xp[:, i:i + stride * ho:stride, j:j + stride * wo:stride, :])
    if k_pad > 0:
        taps.append(jnp.zeros((n, ho, wo, k_pad), jnp.bfloat16))   # fused K padding
    patches = jnp.concatenate(taps, axis=-1)          # (N, Ho, Wo, Kp) bf16
    return patches.reshape(n * ho * wo, kh * kw * c + k_pad), ho, wo
    # TODO(synk): patch extraction still runs as XLA strided slices (input is
    # replicated 49x in HBM); moving the 7x7 tap gather into the kernel with an
    # (N, Ho-tile) grid + unrolled tap accumulation would remove this HBM pass.


def _fold_bn(gamma, beta, mean, var, eps=1e-5):
    scale = gamma / jnp.sqrt(var + eps)
    shift = beta - mean * scale
    return scale, shift


# -----------------------------------------------------------------------------
# Parameter init (deterministic, synthetic — no checkpoint load).
# -----------------------------------------------------------------------------
def init_params(key):
    k_stem, k_red, k_bn1, k_bn2 = jax.random.split(key, 4)
    params = {}
    # IFN stem stand-in: Conv2d(3, C_FEAT, k=7, s=4, p=3, bias=False) + BN + ReLU
    params["stem_w"] = 0.05 * jax.random.normal(k_stem, (C_FEAT, 3, 7, 7), jnp.float32)
    params["stem_bn"] = (
        1.0 + 0.1 * jax.random.normal(k_bn1, (C_FEAT,), jnp.float32),                             # gamma
        0.05 * jax.random.normal(jax.random.fold_in(k_bn1, 1), (C_FEAT,), jnp.float32),           # beta
        0.01 * jax.random.normal(jax.random.fold_in(k_bn1, 2), (C_FEAT,), jnp.float32),           # running_mean
        jnp.abs(1.0 + 0.1 * jax.random.normal(jax.random.fold_in(k_bn1, 3), (C_FEAT,), jnp.float32)),  # running_var
    )
    # reduce_blocks[0]: BasicBlock2D = Conv2d(C_FEAT, C_REDUCE, 1, bias=False) + BN + ReLU
    params["reduce_w"] = 0.1 * jax.random.normal(k_red, (C_REDUCE, C_FEAT, 1, 1), jnp.float32)
    params["reduce_bn"] = (
        1.0 + 0.1 * jax.random.normal(k_bn2, (C_REDUCE,), jnp.float32),
        0.05 * jax.random.normal(jax.random.fold_in(k_bn2, 1), (C_REDUCE,), jnp.float32),
        0.01 * jax.random.normal(jax.random.fold_in(k_bn2, 2), (C_REDUCE,), jnp.float32),
        jnp.abs(1.0 + 0.1 * jax.random.normal(jax.random.fold_in(k_bn2, 3), (C_REDUCE,), jnp.float32)),
    )
    return params


# -----------------------------------------------------------------------------
# PyramidFeat2D_v1.forward equivalent.
# -----------------------------------------------------------------------------
def pyramid_feat2d_forward(images_nchw, params, data_dict=None, *, tile_m=2048):
    """images: (N, 3, H_in, W_in) NCHW float32 -> batch_dict (same keys as PyTorch)."""
    batch_dict = {}
    n = images_nchw.shape[0]

    # Single NCHW -> NHWC conversion at the module boundary; internal work is NHWC.
    images_nhwc = jnp.transpose(images_nchw, (0, 2, 3, 1))
    c_in = images_nhwc.shape[-1]

    # ---- fold BN into constant weights at trace time ----
    s_scale, s_shift = _fold_bn(*params["stem_bn"])
    r_scale, r_shift = _fold_bn(*params["reduce_bn"])

    kh = kw = STEM_K
    K = kh * kw * c_in
    Kp = _round_up(K, LANE)

    # stem weight (C_FEAT, C_in, kh, kw) -> (K, C_FEAT), tap-major/channel-minor.
    w1 = params["stem_w"].transpose(2, 3, 1, 0).reshape(K, C_FEAT) * s_scale[None, :]
    # reduce 1x1 weight (C_REDUCE, C_FEAT, 1, 1) -> (C_FEAT, C_REDUCE), BN folded.
    w2 = params["reduce_w"].reshape(C_REDUCE, C_FEAT).T * r_scale[None, :]

    # ---- lane-dense packed operands: feat -> lanes [0:C_FEAT], red -> [C_FEAT:C_FEAT+C_REDUCE]
    w1p = jnp.zeros((Kp, LANE), jnp.float32).at[:K, :C_FEAT].set(w1).astype(jnp.bfloat16)
    b1p = jnp.zeros((1, LANE), jnp.float32).at[0, :C_FEAT].set(s_shift)
    w2p = (jnp.zeros((LANE, LANE), jnp.float32)
           .at[:C_FEAT, C_FEAT:C_FEAT + C_REDUCE].set(w2).astype(jnp.bfloat16))
    b2p = jnp.zeros((1, LANE), jnp.float32).at[0, C_FEAT:C_FEAT + C_REDUCE].set(r_shift)

    # ---- im2col (bf16, K padding fused) + M padding to the tile size ----
    patches, ho, wo = _im2col_nhwc_padded(images_nhwc, kh, kw, STEM_S, STEM_P, Kp - K)
    M = patches.shape[0]
    # Big tiles for HBM roofline, but keep >= 2 grid steps when possible so the
    # second TensorCore (v7x megacore) is not idle; no waste on tiny inputs.
    tm = max(8, min(tile_m, _round_up(pl.cdiv(M, 2), 8)))
    Mp = _round_up(M, tm)
    xp = jnp.pad(patches, ((0, Mp - M), (0, 0)))

    # ---- one fused Pallas call: packed (layer1 | channel_16) bf16 slab ----
    packed = fused_stem_reduce(xp, w1p, b1p, w2p, b2p, tile_m=tm)

    layer1_nhwc = packed[:M, :C_FEAT].astype(jnp.float32).reshape(n, ho, wo, C_FEAT)
    red_nhwc = (packed[:M, C_FEAT:C_FEAT + C_REDUCE]
                .astype(jnp.float32).reshape(n, ho, wo, C_REDUCE))
    # NOTE: rows M..Mp of the slab hold relu(bias) junk from zero-padded patches;
    # they are sliced off here and never exposed.

    # NHWC -> NCHW only at the module boundary (PyTorch layout).
    image_features = jnp.transpose(layer1_nhwc, (0, 3, 1, 2))
    red_features = jnp.transpose(red_nhwc, (0, 3, 1, 2))

    ifn_result = {FEAT_EXTRACT_LAYER: image_features}
    if data_dict is not None:
        data_dict["img_feats"] = [ifn_result[FEAT_EXTRACT_LAYER]]

    batch_dict["channel_16_feat2d"] = red_features
    batch_dict[FEAT_EXTRACT_LAYER + "_feat2d"] = image_features
    # (training-mode detach_() of logits / image_features is a no-op for inference semantics)
    return batch_dict


if __name__ == "__main__":
    key = jax.random.PRNGKey(0)
    k_img, k_par = jax.random.split(key)
    N, H, W = 2, 16, 16
    images = jax.random.normal(k_img, (N, 3, H, W), jnp.float32)
    params = init_params(k_par)

    batch_dict = pyramid_feat2d_forward(images, params)
    for v in batch_dict.values():
        jax.block_until_ready(v)

    assert batch_dict["channel_16_feat2d"].shape == (N, C_REDUCE, H // 4, W // 4)
    assert batch_dict["layer1_feat2d"].shape == (N, C_FEAT, H // 4, W // 4)
    assert bool(jnp.all(batch_dict["channel_16_feat2d"] >= 0))  # ReLU applied
    assert bool(jnp.all(batch_dict["layer1_feat2d"] >= 0))

    # Correctness check vs a pure-JAX reference using the same bf16-cast operands.
    # (bf16 inputs/weights/outputs are intentional: ~1e-2 relative error budget.)
    imgs_nhwc = jnp.transpose(images, (0, 2, 3, 1))
    K = STEM_K * STEM_K * 3
    patches, ho, wo = _im2col_nhwc_padded(imgs_nhwc, STEM_K, STEM_K, STEM_S, STEM_P, 0)
    s_scale, s_shift = _fold_bn(*params["stem_bn"])
    r_scale, r_shift = _fold_bn(*params["reduce_bn"])
    w1 = (params["stem_w"].transpose(2, 3, 1, 0).reshape(K, C_FEAT)
          * s_scale[None, :]).astype(jnp.bfloat16).astype(jnp.float32)
    w2 = (params["reduce_w"].reshape(C_REDUCE, C_FEAT).T
          * r_scale[None, :]).astype(jnp.bfloat16).astype(jnp.float32)
    x_ref = patches.astype(jnp.float32)
    ref1 = jnp.maximum(x_ref @ w1 + s_shift[None, :], 0.0)
    ref2 = jnp.maximum(ref1.astype(jnp.bfloat16).astype(jnp.float32) @ w2
                       + r_shift[None, :], 0.0)
    got1 = jnp.transpose(batch_dict["layer1_feat2d"], (0, 2, 3, 1)).reshape(-1, C_FEAT)
    got2 = jnp.transpose(batch_dict["channel_16_feat2d"], (0, 2, 3, 1)).reshape(-1, C_REDUCE)
    assert jnp.allclose(got1, ref1, atol=2e-2, rtol=2e-2)
    assert jnp.allclose(got2, ref2, atol=2e-2, rtol=2e-2)

    print("KERNEL_OK")
</pallas_src>

<mosaic_0001>
module attributes {stable_mosaic.version = 11 : i64} {
  func.func @_fused_stem_reduce_kernel(%arg0: i32, %arg1: memref<16x256xbf16, #tpu.memory_space<vmem>>, %arg2: memref<256x128xbf16, #tpu.memory_space<vmem>>, %arg3: memref<1x128xf32, #tpu.memory_space<vmem>>, %arg4: memref<128x128xbf16, #tpu.memory_space<vmem>>, %arg5: memref<1x128xf32, #tpu.memory_space<vmem>>, %arg6: memref<16x128xbf16, #tpu.memory_space<vmem>>) attributes {dimension_semantics = [#tpu.dimension_semantics<parallel>], iteration_bounds = array<i64: 2>, scalar_prefetch = 0 : i64, scratch_operands = 0 : i64, tpu.core_type = #tpu.core_type<tc>, window_params = [{transform_indices = @transform_0, window_bounds = array<i64: 16, 256>}, {pipeline_mode = #tpu.pipeline_mode<synchronous>, transform_indices = @transform_1, window_bounds = array<i64: 256, 128>}, {pipeline_mode = #tpu.pipeline_mode<synchronous>, transform_indices = @transform_2, window_bounds = array<i64: 1, 128>}, {pipeline_mode = #tpu.pipeline_mode<synchronous>, transform_indices = @transform_3, window_bounds = array<i64: 128, 128>}, {pipeline_mode = #tpu.pipeline_mode<synchronous>, transform_indices = @transform_4, window_bounds = array<i64: 1, 128>}, {transform_indices = @transform_5, window_bounds = array<i64: 16, 128>}]} {
    %c0 = arith.constant 0 : index
    %c0_0 = arith.constant 0 : index
    %0 = vector.load %arg1[%c0, %c0_0] : memref<16x256xbf16, #tpu.memory_space<vmem>>, vector<16x256xbf16>
    %c0_1 = arith.constant 0 : index
    %c0_2 = arith.constant 0 : index
    %1 = vector.load %arg2[%c0_1, %c0_2] : memref<256x128xbf16, #tpu.memory_space<vmem>>, vector<256x128xbf16>
    %cst = arith.constant dense<0.000000e+00> : vector<16x128xf32>
    %2 = tpu.matmul %0, %1, %cst {dimension_numbers = #tpu.dot_dimension_numbers<[1], [0], [0], [1], [0, 0, 1, 1], [], []>} : vector<16x256xbf16>, vector<256x128xbf16>, vector<16x128xf32> -> vector<16x128xf32>
    %c0_3 = arith.constant 0 : index
    %c0_4 = arith.constant 0 : index
    %3 = vector.load %arg3[%c0_3, %c0_4] : memref<1x128xf32, #tpu.memory_space<vmem>>, vector<1x128xf32>
    %4 = vector.broadcast %3 : vector<1x128xf32> to vector<16x128xf32>
    %5 = arith.addf %2, %4 : vector<16x128xf32>
    %cst_5 = arith.constant 0.000000e+00 : f32
    %6 = vector.broadcast %cst_5 : f32 to vector<16x128xf32>
    %7 = arith.maximumf %5, %6 : vector<16x128xf32>
    %8 = arith.truncf %7 : vector<16x128xf32> to vector<16x128xbf16>
    %c0_6 = arith.constant 0 : index
    %c0_7 = arith.constant 0 : index
    %9 = vector.load %arg4[%c0_6, %c0_7] : memref<128x128xbf16, #tpu.memory_space<vmem>>, vector<128x128xbf16>
    %cst_8 = arith.constant dense<0.000000e+00> : vector<16x128xf32>
    %10 = tpu.matmul %8, %9, %cst_8 {dimension_numbers = #tpu.dot_dimension_numbers<[1], [0], [0], [1], [0, 0, 1, 1], [], []>} : vector<16x128xbf16>, vector<128x128xbf16>, vector<16x128xf32> -> vector<16x128xf32>
    %c0_9 = arith.constant 0 : index
    %c0_10 = arith.constant 0 : index
    %11 = vector.load %arg5[%c0_9, %c0_10] : memref<1x128xf32, #tpu.memory_space<vmem>>, vector<1x128xf32>
    %12 = vector.broadcast %11 : vector<1x128xf32> to vector<16x128xf32>
    %13 = arith.addf %10, %12 : vector<16x128xf32>
    %cst_11 = arith.constant 0.000000e+00 : f32
    %14 = vector.broadcast %cst_11 : f32 to vector<16x128xf32>
    %15 = arith.maximumf %13, %14 : vector<16x128xf32>
    %16 = arith.truncf %15 : vector<16x128xf32> to vector<16x128xbf16>
    %17 = arith.addf %8, %16 : vector<16x128xbf16>
    %c0_12 = arith.constant 0 : index
    %c0_13 = arith.constant 0 : index
    %18 = vector.load %arg6[%c0_12, %c0_13] : memref<16x128xbf16, #tpu.memory_space<vmem>>, vector<16x128xbf16>
    tpu.vector_store %arg6[%c0_12, %c0_13], %17 {strides = array<i32>} : memref<16x128xbf16, #tpu.memory_space<vmem>>, vector<16x128xbf16>,
    return
  }
  func.func @transform_0(%arg0: i32) -> (i32, i32) {
    %c0_i32 = arith.constant 0 : i32
    %c0_i32_0 = arith.constant 0 : i32
    return %arg0, %c0_i32 : i32, i32
  }
  func.func @transform_1(%arg0: i32) -> (i32, i32) {
    %c0_i32 = arith.constant 0 : i32
    %c0_i32_0 = arith.constant 0 : i32
    %c0_i32_1 = arith.constant 0 : i32
    return %c0_i32, %c0_i32_0 : i32, i32
  }
  func.func @transform_2(%arg0: i32) -> (i32, i32) {
    %c0_i32 = arith.constant 0 : i32
    %c0_i32_0 = arith.constant 0 : i32
    %c0_i32_1 = arith.constant 0 : i32
    return %c0_i32, %c0_i32_0 : i32, i32
  }
  func.func @transform_3(%arg0: i32) -> (i32, i32) {
    %c0_i32 = arith.constant 0 : i32
    %c0_i32_0 = arith.constant 0 : i32
    %c0_i32_1 = arith.constant 0 : i32
    return %c0_i32, %c0_i32_0 : i32, i32
  }
  func.func @transform_4(%arg0: i32) -> (i32, i32) {
    %c0_i32 = arith.constant 0 : i32
    %c0_i32_0 = arith.constant 0 : i32
    %c0_i32_1 = arith.constant 0 : i32
    return %c0_i32, %c0_i32_0 : i32, i32
  }
  func.func @transform_5(%arg0: i32) -> (i32, i32) {
    %c0_i32 = arith.constant 0 : i32
    %c0_i32_0 = arith.constant 0 : i32
    return %arg0, %c0_i32 : i32, i32
  }
}

</mosaic_0001>

<bundles_post_ra>
// kernel: tpu_custom_call.1
= control target key start
LH: loop header
LB: loop body
LE: loop exit
PB: predicated region body
PF: predicated region fallthrough
CT: control target
= control target key end

     0   :  { %10 = vsyncpa [#allocation3], 0  ;;  %s1348_s0 = inlined_call_operand.hbm [shape: bf16[32,256], index: 0, kind: input, shape index: {}]   ;;  %s1349_s1 = inlined_call_operand.hbm [shape: bf16[256,128], index: 1, kind: input, shape index: {}]   ;;  %s1350_s2 = inlined_call_operand.vmem [shape: f32[1,128], index: 2, kind: input, shape index: {}]   ;;  %s1351_s3 = inlined_call_operand.hbm [shape: bf16[128,128], index: 3, kind: input, shape index: {}]   ;;  %s1352_s4 = inlined_call_operand.vmem [shape: f32[1,128], index: 4, kind: input, shape index: {}]   ;;  %s1353_s5 = inlined_call_operand.hbm [shape: bf16[32,128], index: 5, kind: output, shape index: {}]  }
   0x1   :  { %12 = vsyncpa [#allocation3 + $0x1], 0 }
   0x2   :  { %13 = vsyncpa [#allocation6], 0 }
   0x3   :  { %14 = vsyncpa [#allocation4], 0 }
   0x4   :  { %16 = vsyncpa [#allocation4 + $0x1], 0  ;;  %s1103_s18 = smov 0   ;;  %s1105_s19 = smov 0  }
   0x5   :  { %s1107_s20 = smov 0   ;;  %s1109_s21 = smov 0  }
   0x6 LB: > { %s1124_s22 = sadd.s32 4294967295, %s1059_s21   ;;  %s698_s23 = sadd.s32 4294967294, %s1059_s21   ;;  %s1059_s21 = sphi %s1109_s21, %s1373_s21   ;;  %s1055_s20 = sphi %s1107_s20, %s1372_s20   ;;  %s1051_s19 = sphi %s1105_s19, %s1371_s19   ;;  %s1047_s18 = sphi %s1103_s18, %s1370_s18  }
   0x7   : > { %p42_p0 = scmp.ne.s32.totalorder %s1051_s19, %s1047_s18  ;;  %p1354_p1 = scmp.eq.s32.totalorder %s1124_s22, 0 }
   0x8   : > { %p156_p3 = scmp.eq.s32.totalorder %s698_s23, 1  ;;  %p699_p5 = scmp.ge.s32.totalorder %s1059_s21, 1 }
   0x9   : > { %p1133_p4 = por %p1354_p1, %p42_p0  ;;  %p163_p7 = scmp.lt.s32.totalorder %s1059_s21, 3 }
   0xa   : > { %p1138_p6 = por %p156_p3, %p42_p0  ;;  %s1061_s27 = smov [#allocation5]  }
   0xb   : > { %s1357_s24 = scalar_select %p1133_p4, 1, 0 }
   0xc   : > { %s1358_s25 = scalar_select %p1138_p6, 1, 0 }
   0xd   : > { %p1143_p8 = pnand %p699_p5, %p163_p7  ;;  %s175_s28 = sshll.u32 %s1061_s27, 4  ;;  %s1147_s28 = int_to_ptr.vmem [resolvable:$true] %s175_s28 }
   0xe   : > { %s1062_s30 = smov [#allocation7]   ;;  %s903_s9 = scalar_lea.hbm %s1349_s1, 2048 }
   0xf   : > { %p813_p9 = pneg %p1143_p8  ;;  %s191_s6 = sshll.u32 %s1062_s30, 4  ;;  %s1158_s6 = int_to_ptr.vmem [resolvable:$true] %s191_s6 }
  0x10   : > { %p904_p12 = scmp.ne.s32.totalorder %s1349_s1, %s903_s9  ;;  %p910_p5 = scmp.lt.u32.totalorder %s903_s9, %s1349_s1 }
  0x11   : > { %p1154_p11 = pnand %p813_p9, %p1354_p1 }
  0x13   : > { %p905_p13 = pneg %p1154_p11 }
  0x15   : > { %p906_p0 = pnand %p905_p13, %p904_p12 }
  0x17   : > { %p907_p3 = pneg %p906_p0 }
  0x19   : > { %p912_p7 = pnand %p910_p5, %p907_p3 }
  0x1b   : > { %915 = shalt.err (!%p912_p7)
}
  0x1c   : > { %s916_s14 = scalar_lea.vmem %s1147_s28, 2048  ;;  %p924_p2 = scmp.lt.s32.totalorder %s1147_s28, %s1147_s28 }
  0x1d   : > { %p917_p9 = scmp.ne.s32.totalorder %s1147_s28, %s916_s14  ;;  %p925_p12 = scmp.lt.s32.totalorder %s916_s14, %s916_s14 }
  0x1f   : > { %p919_p10 = pnand %p917_p9, %p905_p13  ;;  %p926_p0 = por %p925_p12, %p924_p2 }
  0x21   : > { %p920_p1 = pneg %p919_p10 }
  0x23   : > { %p927_p6 = pnand %p926_p0, %p920_p1 }
  0x25   : > { %930 = shalt.err (!%p927_p6)
}
  0x26   : > { %s1063_s15 = smov 64   ;;  %s1064_s16 = smov 4  }
  0x27   : > { %816 = dma.hbm_to_vmem [thread:$0]  (!%p1154_p11), %s1349_s1, 2048, %s1147_s28, [#allocation6], %s1063_s15, %s1063_s15, %s1064_s16  }
  0x28   : > { %s931_s7 = scalar_lea.hbm %s1351_s3, 1024 }
  0x29   : > { %p932_p2 = scmp.ne.s32.totalorder %s1351_s3, %s931_s7  ;;  %p938_p10 = scmp.lt.u32.totalorder %s931_s7, %s1351_s3 }
  0x2b   : > { %p934_p1 = pnand %p932_p2, %p905_p13 }
  0x2d   : > { %p935_p6 = pneg %p934_p1 }
  0x2f   : > { %p940_p3 = pnand %p938_p10, %p935_p6 }
  0x31   : > { %943 = shalt.err (!%p940_p3)
}
  0x32   : > { %s944_s28 = scalar_lea.vmem %s1158_s6, 1024  ;;  %p952_p12 = scmp.lt.s32.totalorder %s1158_s6, %s1158_s6 }
  0x33   : > { %p945_p5 = scmp.ne.s32.totalorder %s1158_s6, %s944_s28  ;;  %p953_p0 = scmp.lt.s32.totalorder %s944_s28, %s944_s28 }
  0x35   : > { %p947_p7 = pnand %p945_p5, %p905_p13  ;;  %p954_p2 = por %p953_p0, %p952_p12 }
  0x37   : > { %p948_p9 = pneg %p947_p7 }
  0x39   : > { %p955_p1 = pnand %p954_p2, %p948_p9 }
  0x3b   : > { %958 = shalt.err (!%p955_p1)
}
  0x3c   : > { %819 = dma.hbm_to_vmem [thread:$0]  (!%p1154_p11), %s1351_s3, 1024, %s1158_s6, [#allocation6], %s1063_s15, %s1063_s15, %s1064_s16  }
  0x3d   : > { %s1213_s14 = sadd.s32 1, %s1059_s21   ;;  %s29_s29 = sadd.s32 1, %s1055_s20 }
  0x3e   : > { %s26_s17 = ssub.s32 %s1059_s21, %s1213_s14  ;;  %p36_p13 = scmp.ne.s32.totalorder %s1055_s20, %s1051_s19 }
  0x3f   : > { %p27_p6 = scmp.eq.s32.totalorder %s26_s17, 0  ;;  %p37_p10 = scmp.eq.s32.totalorder %s1059_s21, 0 }
  0x40   : > { %p1361_p3 = scmp.eq.s32.totalorder %s1124_s22, 1  ;;  %p830_p7 = scmp.lt.s32.totalorder %s1059_s21, 2 }
  0x41   : > { %s1229_s27 = scalar_select %p27_p6, %s1055_s20, %s29_s29  }
  0x42   : > { %p1223_p5 = por %p1361_p3, %p36_p13  ;;  %p38_p9 = por %p37_p10, %p36_p13 }
  0x43   : > { %s208_s30 = sand.u32 1, %s1055_s20   ;;  %s748_s6 = sshll.u32 %s1059_s21, 8 }
  0x44   : > { %s1362_s23 = scalar_select %p1223_p5, 1, 0 }
  0x45   : > { %s703_s7 = sshll.u32 %s208_s30, 4  ;;  %s1236_s8 = scalar_lea.hbm %s1348_s0, %s748_s6 }
  0x46   : > { %s212_s9 = scalar_lea.vmem [#allocation2], %s703_s7  ;;  %p1240_p11 = pnand %p830_p7, %p38_p9 }
  0x47   : > { %s220_s10 = sshll.u32 %s212_s9, 4  ;;  %s1244_s28 = scalar_lea.sflag [#allocation3], %s208_s30  ;;  %s1238_s10 = int_to_ptr.vmem [resolvable:$true] %s220_s10 }
  0x48   : > { %s959_s12 = scalar_lea.hbm %s1236_s8, 256  ;;  %p961_p0 = pneg %p1240_p11 }
  0x49   : > { %p960_p12 = scmp.ne.s32.totalorder %s1236_s8, %s959_s12  ;;  %s964_s17 = scalar_lea.hbm %s1348_s0, 512 }
  0x4a   : > { %p965_p13 = scmp.lt.u32.totalorder %s1236_s8, %s1348_s0  ;;  %p966_p6 = scmp.lt.u32.totalorder %s964_s17, %s959_s12 }
  0x4b   : > { %p962_p2 = pnand %p961_p0, %p960_p12  ;;  %p968_p3 = scmp.lt.u32.totalorder %s959_s12, %s1236_s8 }
  0x4c   : > { %p967_p10 = por %p966_p6, %p965_p13 }
  0x4d   : > { %p963_p1 = pneg %p962_p2 }
  0x4e   : > { %p969_p7 = por %p968_p3, %p967_p10 }
  0x50   : > { %p970_p9 = pnand %p969_p7, %p963_p1 }
  0x52   : > { %973 = shalt.err (!%p970_p9)
}
  0x53   : > { %s974_s30 = scalar_lea.vmem %s1238_s10, 256  ;;  %s1065_s15 = smov [#allocation2]  }
  0x54   : > { %p975_p12 = scmp.ne.s32.totalorder %s1238_s10, %s974_s30  ;;  %s979_s16 = sshll.u32 %s1065_s15, 4  ;;  %s980_s16 = int_to_ptr.vmem [resolvable:$false] %s979_s16 }
  0x55   : > { %s981_s9 = scalar_lea.vmem %s980_s16, 512  ;;  %p982_p4 = scmp.lt.s32.totalorder %s1238_s10, %s980_s16 }
  0x56   : > { %p977_p2 = pnand %p975_p12, %p961_p0  ;;  %p983_p13 = scmp.lt.s32.totalorder %s981_s9, %s974_s30 }
  0x58   : > { %p978_p5 = pneg %p977_p2  ;;  %p984_p6 = por %p983_p13, %p982_p4 }
  0x5a   : > { %p985_p10 = pnand %p984_p6, %p978_p5 }
  0x5c   : > { %988 = shalt.err (!%p985_p10)
}
  0x5d   : > { %s1066_s12 = smov 128   ;;  %s1067_s13 = smov 8  }
  0x5e   : > { %823 = dma.hbm_to_vmem [thread:$0]  (!%p1240_p11), %s1236_s8, 256, %s1238_s10, %s1244_s28, %s1066_s12, %s1066_s12, %s1067_s13  }
  0x5f   : > { %232 = sbr.rel (%p1143_p8) target bundleno = 601 (0x259), region = 40  ;;  %s1275_s29 = sand.u32 (!%p1143_p8), 1, %s1051_s19  }
  0x60   : > { %s708_s17 = sshll.u32 (!%p1143_p8), %s1275_s29, 4  ;;  %s235_s7 = scalar_lea.sflag (!%p1143_p8), [#allocation3], %s1275_s29 }
  0x61   : > { %s1279_s6 = scalar_lea.vmem (!%p1143_p8), [#allocation2], %s708_s17  ;;  %p1364_p4 = scmp.ne.s32.totalorder (!%p1143_p8), %s1357_s24, 0 }
  0x66   : > { %1034 = dma.done.wait (%p1364_p4), %s235_s7, 256  }
  0x67   : > { %1036 = vsyncadd (%p1364_p4), %s235_s7, 4294967040  ;;  %p1365_p5 = scmp.eq.s32.totalorder %s1124_s22, 0 }
  0x69   : > { %1038 = dma.done.wait (%p1365_p5), [#allocation6], 3072   ;;  %p1366_p8 = pmov %p1365_p5 }
  0x6a   : > { %v1068_v0 = vmov 0.0   ;;  %v876_v1 = vld [vmem:[#allocation5 + $0x40] sm:$0xff]   ;;  %v878_v3 = vld [vmem:[#allocation5 + $0x48] sm:$0xff]   ;;  %v880_v5 = vld [vmem:[#allocation5 + $0x50] sm:$0xff]   ;;  %vm1069_vm0 = vmmov 0   ;;  %s711_s11 = sshll.u32 %s1275_s29, 3 }
  0x6b   : > { %1040 = vsyncadd (%p1366_p8), [#allocation6], 4294964224  ;;  %781 = vmatprep.subr.bf16.mxu1 %v1068_v0  ;;  %v877_v2 = vld [vmem:[#allocation5] sm:$0xff]   ;;  %750 = vmatprep.subr.bf16.mxu0 %v876_v1  ;;  %v879_v4 = vld [vmem:[#allocation5 + $0x8] sm:$0xff]   ;;  %s749_s28 = sshll.u32 %s1124_s22, 7  ;;  %s272_s30 = scalar_lea.vmem [#allocation8], %s711_s11 }
  0x6c   : > { %751 = vmatpush3.bf16.msra.mxu0 %v877_v2  ;;  %v881_v6 = vld [vmem:[#allocation5 + $0x10] sm:$0xff]   ;;  %v882_v7 = vld [vmem:[#allocation5 + $0x58] sm:$0xff]   ;;  %v884_v9 = vld [vmem:[#allocation5 + $0x60] sm:$0xff]   ;;  %797 = vmatprep.mubr.msk.bf16.mxu1 %vm1069_vm0, %v1068_v0  ;;  %s606_s15 = sshll.u32 %s272_s30, 4  ;;  %s1302_s12 = scalar_lea.hbm %s1353_s5, %s749_s28  ;;  %s1304_s15 = int_to_ptr.vmem [resolvable:$true] %s606_s15 }
  0x6d   : > { %752 = vmatprep.subr.bf16.mxu0 %v878_v3  ;;  %v883_v8 = vld [vmem:[#allocation5 + $0x18] sm:$0xff]   ;;  %v885_v10 = vld [vmem:[#allocation5 + $0x20] sm:$0xff]   ;;  %v886_v11 = vld [vmem:[#allocation5 + $0x68] sm:$0xff]   ;;  %s593_s13 = scalar_lea.sflag [#allocation4], %s1275_s29  ;;  %s989_s17 = scalar_lea.vmem %s1304_s15, 128 }
  0x6e   : > { %v887_v12 = vld [vmem:[#allocation5 + $0x28] sm:$0xff]   ;;  %v895_v14 = vld [vmem:[#allocation7] sm:$0xff]   ;;  %v888_v15 = vld [vmem:[#allocation5 + $0x70] sm:$0xff]   ;;  %p990_p11 = scmp.ne.s32.totalorder %s1304_s15, %s989_s17  ;;  %p1367_p0 = scmp.ne.s32.totalorder %s1362_s23, 0 }
  0x6f   : > { %v894_v13 = vld [vmem:[%s1279_s6 + $0x4] ss:$8 sps:$4 sm:$0xff]   ;;  %782 = vmatpush3.bf16.msra.mxu1 %v895_v14  ;;  %v892_v22 = vld [vmem:[%s1279_s6] ss:$8 sps:$4 sm:$0xff]   ;;  %s1070_s22 = smov [#allocation8]  }
  0x70   : > { %753 = vmatpush3.bf16.msra.mxu0 %v879_v4  ;;  %455 = vmatprep.mubr.bf16.mxu0 %v894_v13  ;;  %v896_v16 = vld [vmem:[#allocation7 + $0x8] sm:$0xff]   ;;  %v889_v17 = vld [vmem:[#allocation5 + $0x30] sm:$0xff]   ;;  %v890_v18 = vld [vmem:[#allocation5 + $0x78] sm:$0xff]   ;;  %p991_p1 = pnand %p990_p11, %p1367_p0  ;;  %s993_s7 = sshll.u32 %s1070_s22, 4  ;;  %s994_s7 = int_to_ptr.vmem [resolvable:$false] %s993_s7 }
  0x71   : > { %754 = vmatprep.subr.bf16.mxu0 %v880_v5  ;;  %783 = vmatprep.subr.bf16.mxu1 %v1068_v0  ;;  %v897_v19 = vld [vmem:[#allocation7 + $0x10] sm:$0xff]   ;;  %v891_v20 = vld [vmem:[#allocation5 + $0x38] sm:$0xff]   ;;  %v899_v23 = vld [vmem:[#allocation7 + $0x20] sm:$0xff]   ;;  %s995_s6 = scalar_lea.vmem %s994_s7, 256  ;;  %p996_p7 = scmp.lt.s32.totalorder %s1304_s15, %s994_s7 }
  0x72   : > { %v898_v21 = vld [vmem:[#allocation7 + $0x18] sm:$0xff]   ;;  %v900_v24 = vld [vmem:[#allocation7 + $0x28] sm:$0xff]   ;;  %v901_v25 = vld [vmem:[#allocation7 + $0x30] sm:$0xff]   ;;  %p992_p3 = pneg %p991_p1  ;;  %p997_p9 = scmp.lt.s32.totalorder %s995_s6, %s989_s17 }
  0x73   : > { %784 = vmatpush3.bf16.msra.mxu1 %v896_v16  ;;  %v902_v26 = vld [vmem:[#allocation7 + $0x38] sm:$0xff]   ;;  %v712_v28 = vld [vmem:[%s1350_s2] ss:$0 sm:$0xff] }
  0x74   : > { %755 = vmatpush3.bf16.msra.mxu0 %v881_v6  ;;  %785 = vmatprep.subr.bf16.mxu1 %v1068_v0  ;;  %v731_v39 = vld [vmem:[%s1352_s4] ss:$0 sm:$0xff]  ;;  %p998_p12 = por %p997_p9, %p996_p7 }
  0x75   : > { %756 = vmatprep.subr.bf16.mxu0 %v882_v7 }
  0x76   : > { %p999_p2 = pnand %p998_p12, %p992_p3 }
  0x77   : > { %786 = vmatpush3.bf16.msra.mxu1 %v897_v19 }
  0x78   : > { %757 = vmatpush3.bf16.msra.mxu0 %v883_v8  ;;  %787 = vmatprep.subr.bf16.mxu1 %v1068_v0 }
  0x79   : > { %758 = vmatprep.subr.bf16.mxu0 %v884_v9 }
  0x7b   : > { %788 = vmatpush3.bf16.msra.mxu1 %v898_v21 }
  0x7c   : > { %759 = vmatpush3.bf16.msra.mxu0 %v885_v10  ;;  %789 = vmatprep.subr.bf16.mxu1 %v1068_v0 }
  0x7d   : > { %760 = vmatprep.subr.bf16.mxu0 %v886_v11 }
  0x7f   : > { %790 = vmatpush3.bf16.msra.mxu1 %v899_v23 }
  0x80   : > { %761 = vmatpush3.bf16.msra.mxu0 %v887_v12  ;;  %791 = vmatprep.subr.bf16.mxu1 %v1068_v0 }
  0x81   : > { %762 = vmatprep.subr.bf16.mxu0 %v888_v15 }
  0x83   : > { %792 = vmatpush3.bf16.msra.mxu1 %v900_v24 }
  0x84   : > { %763 = vmatpush3.bf16.msra.mxu0 %v889_v17  ;;  %793 = vmatprep.subr.bf16.mxu1 %v1068_v0 }
  0x85   : > { %764 = vmatprep.subr.bf16.mxu0 %v890_v18 }
  0x87   : > { %794 = vmatpush3.bf16.msra.mxu1 %v901_v25 }
  0x88   : > { %765 = vmatpush3.bf16.msra.mxu0 %v891_v20  ;;  %795 = vmatprep.subr.bf16.mxu1 %v1068_v0 }
  0x8b   : > { %456 = vmatmul.mubr.bf16.vlgmr.msra.gmra.mrb[0].mxu0 %v892_v22  ;;  %796 = vmatpush3.bf16.msra.mxu1 %v902_v26 }
 0x15e   : > { %v766_v27 = vpop.f32.mrb[0].mxu0 }
 0x15f   : > { %v767_v29 = vpop.f32.mrb[1].mxu0 }
 0x160   : > { %v768_v30 = vadd.f32 %v767_v29, %v766_v27  ;;  %v769_v31 = vpop.f32.mrb[2].mxu0 }
 0x161   : > { %v770_v32 = vpop.f32.mrb[3].mxu0 }
 0x162   : > { %v458_v33 = vadd.f32 %v768_v30, %v712_v28  ;;  %v771_v34 = vadd.f32 %v770_v32, %v769_v31 }
 0x164   : > { %v461_v35 = vadd.f32 %v771_v34, %v712_v28  ;;  %v464_v36 = vmax.f32 %v458_v33, 0.0 }
 0x166   : > { %v465_v37 = vmax.f32 %v461_v35, 0.0 }
 0x168   : > { %v466_v38 = vpack.c.bf16 %v465_v37, %v464_v36 }
 0x16a   : > { %798 = vmatmul.mubr.bf16.vlgmr.msra.gmra.mrb[0].mxu1 %v466_v38 }
 0x23d   : > { %v572_v40 = vpop.f32.mrb[0].mxu1 }
 0x23e   : > { %v573_v41 = vadd.f32 %v731_v39, %v572_v40  ;;  %v799_v42 = vpop.f32.mrb[1].mxu1 }
 0x23f   : > { %v575_v43 = vpop.f32.mrb[2].mxu1 }
 0x240   : > { %v576_v44 = vadd.f32 %v731_v39, %v575_v43  ;;  %v800_v45 = vpop.f32.mrb[3].mxu1  ;;  %v579_v46 = vmax.f32 %v573_v41, 0.0 }
 0x242   : > { %v580_v47 = vmax.f32 %v576_v44, 0.0 }
 0x244   : > { %v581_v48 = vpack.c.bf16 %v580_v47, %v579_v46 }
 0x246   : > { %v582_v49 = vadd.bf16 %v581_v48, %v466_v38 }
 0x248   : > { %v740_v50 = vcombine.low %v582_v49, %v582_v49  ;;  %v741_v51 = vcombine.high %v582_v49, %v582_v49 }
 0x24a   : > { %590 = vst [vmem:[%s272_s30] sm:$0xf] %v740_v50  ;;  %591 = vst [vmem:[%s272_s30 + $0x4] sm:$0xf] %v741_v51 }
 0x24b   : > { %1002 = shalt.err (!%p999_p2)
}
 0x24c   : > { %s1003_s24 = scalar_lea.hbm %s1302_s12, 128  ;;  %s1007_s10 = scalar_lea.hbm %s1353_s5, 256 }
 0x24d   : > { %p1004_p13 = scmp.ne.s32.totalorder %s1302_s12, %s1003_s24  ;;  %p1008_p4 = scmp.lt.u32.totalorder %s1302_s12, %s1353_s5 }
 0x24e   : > { %p1009_p5 = scmp.lt.u32.totalorder %s1007_s10, %s1003_s24  ;;  %p1011_p11 = scmp.lt.u32.totalorder %s1003_s24, %s1302_s12 }
 0x24f   : > { %p1005_p6 = pnand %p1004_p13, %p1367_p0 }
 0x250   : > { %p1010_p8 = por %p1009_p5, %p1008_p4 }
 0x251   : > { %p1006_p10 = pneg %p1005_p6 }
 0x252   : > { %p1012_p1 = por %p1011_p11, %p1010_p8 }
 0x254   : > { %p1013_p3 = pnand %p1012_p1, %p1006_p10 }
 0x256   : > { %1016 = shalt.err (!%p1013_p3)
}
 0x257   : > { %s1071_s30 = smov 64   ;;  %s1072_s16 = smov 4  }
 0x258   : > { %811 = dma.vmem_to_hbm [thread:$0]  (%p1367_p0), %s1304_s15, 128, %s1302_s12, %s593_s13, %s1071_s30, %s1071_s30, %s1072_s16  }
 0x259 PF: > { %s621_s9 = sand.u32 1, %s1047_s18   ;;  %p1368_p7 = scmp.ne.s32.totalorder %s1358_s25, 0 }
 0x25a   : > { %p1369_p9 = scmp.ge.s32.totalorder %s1059_s21, 2  ;;  %s622_s17 = scalar_lea.sflag [#allocation4], %s621_s9 }
 0x25c   : > { %p825_p12 = pnand %p1369_p9, %p1368_p7 }
 0x25e   : > { %1042 = dma.done.wait (!%p825_p12), %s622_s17, 128  }
 0x25f   : > { %1044 = vsyncadd (!%p825_p12), %s622_s17, 4294967168  ;;  %p19_p2 = scmp.ge.s32.totalorder %s1213_s14, 4   ;;  %s1370_s18 = smov %s1051_s19 }
 0x260   : > { %s1371_s19 = smov %s1055_s20  ;;  %s1372_s20 = smov %s1229_s27 }
 0x261   : > { %s1373_s21 = smov %s1213_s14  ;;  %21 = sbr.rel (!%p19_p2) target bundleno = 6 (0x6), region = 93 }
 0x268   :  { %627 = vsyncpa [#allocation3], 1 }
 0x269   :  { %629 = vsyncpa [#allocation3 + $0x1], 1 }
 0x26a   :  { %630 = vsyncpa [#allocation6], 1 }
 0x26b   :  { %631 = vsyncpa [#allocation4], 1 }
 0x26c   :  { %633 = vsyncpa [#allocation4 + $0x1], 1 }

</bundles_post_ra>
